<compile_context>
chip_gen: v7x
topology: tpu7x:2x2x1
jax: 0.10.0
libtpu: 0.0.40
codegen_flags: <defaults>
</compile_context>

<pallas_src>
import functools

import jax
import jax.numpy as jnp
from jax.experimental import pallas as pl
from jax.experimental.pallas import tpu as pltpu


_LANE = 128
_SUBLANE = 8
_MAX_FEATURE_TILE = 8192  # lanes per grid step (<= 64 in-kernel lane blocks)


def _round_up(x, m):
    return -(-x // m) * m


def _vmem_budget():
    """Return (input-tile working-set budget, scoped VMEM limit), generation
    aware: ~96 MiB limit on v5e/v6e (128 MiB physical), ~48 MiB on v7x."""
    try:
        cap = int(pltpu.get_tpu_info().vmem_capacity_bytes)
        if cap <= 0:
            cap = 64 << 20
    except Exception:
        cap = 64 << 20  # conservative fallback, safe on every generation
    limit = min((cap * 3) // 4, 96 << 20)
    return limit // 2, limit


def _choose_row_block(rows):
    """Row-block size: a multiple of 8 (or the full row count when rows < 8),
    kept modest so the (nb, 128) register accumulators stay cheap and so that
    >= 2 row blocks exist whenever rows > 8 (lets the 'parallel' batch axis
    shard across TensorCores)."""
    if rows <= _SUBLANE:
        return rows
    if rows <= 8 * _SUBLANE:       # <= 64
        return _SUBLANE
    if rows <= 32 * _SUBLANE:      # <= 256
        return 2 * _SUBLANE
    return 4 * _SUBLANE


def _choose_feature_tile(cols, nb, p_itemsize, t_itemsize, budget):
    """Feature tile: multiple of 128, <= cols, sized off the VMEM budget for
    the two double-buffered input tiles.  cols < 128 -> one full-width block."""
    if cols < _LANE:
        return cols
    cap = budget // (2 * nb * (p_itemsize + t_itemsize))
    cap = max(_LANE, (cap // _LANE) * _LANE)
    return min((cols // _LANE) * _LANE, cap, _MAX_FEATURE_TILE)


def _dice_sums_kernel(p_ref, t_ref, num_ref, den_ref, num_acc, den_acc, *,
                      p_exp, cols, tile_d, grid_k):
    nb = p_ref.shape[0]

    def den_terms(pv, tv):
        if p_exp == 2:                       # default: stays on the 4-wide VALU
            return pv * pv + tv * tv
        if p_exp == 1:
            return pv + tv
        if (isinstance(p_exp, (int, float)) and float(p_exp).is_integer()
                and p_exp > 0):
            pi = int(p_exp)

            def ipow(x):                     # integer unroll: VALU, no EUP pow
                y = x
                for _ in range(pi - 1):
                    y = y * x
                return y

            return ipow(pv) + ipow(tv)
        return pv ** p_exp + tv ** p_exp     # rare non-integer p

    # cols < 128: single full-width block per row block; reduce directly.
    if tile_d < _LANE:
        pv = p_ref[...].astype(jnp.float32)
        tv = t_ref[...].astype(jnp.float32)
        num_ref[...] = jnp.sum(pv * tv, axis=1, keepdims=True)
        den_ref[...] = jnp.sum(den_terms(pv, tv), axis=1, keepdims=True)
        return

    k = pl.program_id(1)
    last = grid_k - 1
    tail = grid_k * tile_d != cols           # static: last step has OOB lanes
    blocks = tile_d // _LANE

    @pl.when(k == 0)
    def _init():
        num_acc[...] = jnp.zeros_like(num_acc)
        den_acc[...] = jnp.zeros_like(den_acc)

    def accumulate(is_tail):
        # Register accumulation: hot loop is 2 vld + ~6 VALU per data-vreg
        # pair, zero accumulator vst; the (nb, 128) VMEM scratch is touched
        # once per grid step.
        nacc = jnp.zeros((nb, _LANE), jnp.float32)
        dacc = jnp.zeros((nb, _LANE), jnp.float32)
        for j in range(blocks):
            rem = cols - (last * tile_d + j * _LANE) if is_tail else _LANE
            if rem <= 0:                     # static: lane block fully OOB
                continue
            sl = slice(j * _LANE, (j + 1) * _LANE)
            pv = p_ref[:, sl].astype(jnp.float32)
            tv = t_ref[:, sl].astype(jnp.float32)
            num_c = pv * tv
            den_c = den_terms(pv, tv)
            if rem < _LANE:                  # static: mask partial lane block
                lane = jax.lax.broadcasted_iota(jnp.int32, (nb, _LANE), 1)
                valid = lane < rem
                # Mask the *contributions*: exact for any p, immune to the
                # unspecified values in the out-of-bounds block region.
                num_c = jnp.where(valid, num_c, 0.0)
                den_c = jnp.where(valid, den_c, 0.0)
            nacc = nacc + num_c
            dacc = dacc + den_c
        num_acc[...] += nacc
        den_acc[...] += dacc

    if not tail:
        accumulate(False)
    elif grid_k == 1:
        accumulate(True)
    else:
        @pl.when(k != last)
        def _body():
            accumulate(False)

        @pl.when(k == last)
        def _tail():
            accumulate(True)

    @pl.when(k == last)
    def _finalize():
        # Single cross-lane (XLU) reduce per row block.
        num_ref[...] = jnp.sum(num_acc[...], axis=1, keepdims=True)
        den_ref[...] = jnp.sum(den_acc[...], axis=1, keepdims=True)


class BinaryDiceLoss:
    """JAX/Pallas port of neuralnet.utils.BinaryDiceLoss (forward)."""

    def __init__(self, smooth=1, p=2, reduction="mean"):
        self.smooth = float(smooth)
        self.p = p
        self.reduction = reduction

    def __call__(self, predict, target):
        assert predict.shape[0] == target.shape[0], (
            "predict & target batch size don't match")
        n = predict.shape[0]
        pr = predict.reshape(n, -1)
        tg = target.reshape(n, -1)
        d = pr.shape[1]

        # Small-batch sublane fold: (N, D) -> (N*8, D/8). Pure metadata reshape
        # of contiguous rows (no HBM copy); only applied when exact, so every
        # (8,128) vreg sublane carries real data.
        fold = _SUBLANE if (n < _SUBLANE and d >= _SUBLANE
                            and d % _SUBLANE == 0) else 1
        if fold > 1:
            pr = pr.reshape(n * fold, d // fold)
            tg = tg.reshape(n * fold, d // fold)

        rows, cols = pr.shape
        nb = _choose_row_block(rows)
        budget, vmem_limit = _vmem_budget()
        tile_d = _choose_feature_tile(cols, nb, pr.dtype.itemsize,
                                      tg.dtype.itemsize, budget)
        grid = (pl.cdiv(rows, nb), pl.cdiv(cols, tile_d))

        kernel = functools.partial(_dice_sums_kernel, p_exp=self.p, cols=cols,
                                   tile_d=tile_d, grid_k=grid[1])

        num_out, den_out = pl.pallas_call(
            kernel,
            out_shape=(jax.ShapeDtypeStruct((rows, 1), jnp.float32),
                       jax.ShapeDtypeStruct((rows, 1), jnp.float32)),
            grid_spec=pltpu.PrefetchScalarGridSpec(
                num_scalar_prefetch=0,
                grid=grid,
                in_specs=[
                    pl.BlockSpec((nb, tile_d), lambda i, k: (i, k)),
                    pl.BlockSpec((nb, tile_d), lambda i, k: (i, k)),
                ],
                out_specs=[
                    pl.BlockSpec((nb, 1), lambda i, k: (i, 0)),
                    pl.BlockSpec((nb, 1), lambda i, k: (i, 0)),
                ],
                scratch_shapes=[
                    pltpu.VMEM((nb, _LANE), jnp.float32),
                    pltpu.VMEM((nb, _LANE), jnp.float32),
                ],
            ),
            compiler_params=pltpu.CompilerParams(
                # TODO(synk): on v7x, pltpu.CORE_PARALLEL on axis 0 would shard
                # row blocks across the two TensorCores; kept "parallel" here
                # for portability across v5e/v6e/v7x.
                dimension_semantics=("parallel", "arbitrary"),
                vmem_limit_bytes=vmem_limit),
        )(pr, tg)

        num_r = num_out[:, 0]
        den_r = den_out[:, 0]
        if fold > 1:
            num_r = jnp.sum(num_r.reshape(n, fold), axis=1)
            den_r = jnp.sum(den_r.reshape(n, fold), axis=1)

        loss = 1.0 - (num_r + self.smooth) / (den_r + self.smooth)  # (N,)

        if self.reduction == "mean":
            return jnp.mean(loss)
        elif self.reduction == "sum":
            return jnp.sum(loss)
        elif self.reduction == "none":
            return loss
        else:
            raise Exception("Unexpected reduction {}".format(self.reduction))


def _reference(predict, target, smooth=1.0, p=2, reduction="mean"):
    n = predict.shape[0]
    pr = predict.reshape(n, -1).astype(jnp.float32)
    tg = target.reshape(n, -1).astype(jnp.float32)
    num = jnp.sum(pr * tg, axis=1) + smooth
    den = jnp.sum(pr ** p + tg ** p, axis=1) + smooth
    loss = 1.0 - num / den
    if reduction == "mean":
        return jnp.mean(loss)
    if reduction == "sum":
        return jnp.sum(loss)
    return loss


if __name__ == "__main__":
    key = jax.random.PRNGKey(0)
    k1, k2, k3, k4, k5, k6 = jax.random.split(key, 6)

    # Test 1: small NCHW segmentation-style input [2, 4, 16, 16], small batch
    # (sublane fold), mean reduction.
    predict = jax.nn.sigmoid(
        jax.random.normal(k1, (2, 4, 16, 16), dtype=jnp.float32))
    target = (jax.random.uniform(k2, (2, 4, 16, 16)) > 0.5).astype(jnp.float32)
    out = jax.block_until_ready(
        BinaryDiceLoss(smooth=1, p=2, reduction="mean")(predict, target))
    ref = _reference(predict, target, 1.0, 2, "mean")
    assert jnp.allclose(out, ref, rtol=1e-5, atol=1e-5), (out, ref)

    # Test 2: batch >= 8, feature dim not a multiple of 128 -> uneven feature
    # grid + in-kernel tail mask (no jnp.pad), 'none' reduction.
    predict2 = jax.nn.sigmoid(
        jax.random.normal(k3, (8, 3, 17, 19), dtype=jnp.float32))
    target2 = (jax.random.uniform(k4, (8, 3, 17, 19)) > 0.5).astype(jnp.float32)
    out2 = jax.block_until_ready(
        BinaryDiceLoss(smooth=1, p=2, reduction="none")(predict2, target2))
    ref2 = _reference(predict2, target2, 1.0, 2, "none")
    assert jnp.allclose(out2, ref2, rtol=1e-5, atol=1e-5), (out2, ref2)

    # Test 3: batch not a multiple of 8 (uneven row grid) + integer p=3
    # (VALU-unrolled power), 'sum' reduction.
    predict3 = jax.nn.sigmoid(jax.random.normal(k5, (10, 257), dtype=jnp.float32))
    target3 = (jax.random.uniform(k6, (10, 257)) > 0.5).astype(jnp.float32)
    out3 = jax.block_until_ready(
        BinaryDiceLoss(smooth=1, p=3, reduction="sum")(predict3, target3))
    ref3 = _reference(predict3, target3, 1.0, 3, "sum")
    assert jnp.allclose(out3, ref3, rtol=1e-5, atol=1e-5), (out3, ref3)

    # Test 4: bf16 inputs stream at half the HBM bytes; accumulation stays f32.
    out4 = jax.block_until_ready(
        BinaryDiceLoss()(predict.astype(jnp.bfloat16),
                         target.astype(jnp.bfloat16)))
    assert jnp.allclose(out4, ref, rtol=2e-2, atol=2e-2), (out4, ref)

    # Test 5: feature dim < 128 and batch < 8 with no exact /8 fold
    # (full-width single-block path).
    predict5 = jax.nn.sigmoid(jax.random.normal(k1, (3, 5, 7), dtype=jnp.float32))
    target5 = (jax.random.uniform(k2, (3, 5, 7)) > 0.5).astype(jnp.float32)
    out5 = jax.block_until_ready(
        BinaryDiceLoss(reduction="none")(predict5, target5))
    ref5 = _reference(predict5, target5, 1.0, 2, "none")
    assert jnp.allclose(out5, ref5, rtol=1e-5, atol=1e-5), (out5, ref5)

    print("KERNEL_OK")
</pallas_src>

<mosaic_0001>
module attributes {stable_mosaic.version = 11 : i64} {
  func.func @_dice_sums_kernel(%arg0: i32, %arg1: i32, %arg2: memref<8x128xf32, #tpu.memory_space<vmem>>, %arg3: memref<8x128xf32, #tpu.memory_space<vmem>>, %arg4: memref<8x1xf32, #tpu.memory_space<vmem>>, %arg5: memref<8x1xf32, #tpu.memory_space<vmem>>, %arg6: memref<8x128xf32, #tpu.memory_space<vmem>>, %arg7: memref<8x128xf32, #tpu.memory_space<vmem>>) attributes {dimension_semantics = [#tpu.dimension_semantics<parallel>, #tpu.dimension_semantics<arbitrary>], iteration_bounds = array<i64: 2, 1>, scalar_prefetch = 0 : i64, scratch_operands = 2 : i64, tpu.core_type = #tpu.core_type<tc>, window_params = [{transform_indices = @transform_0, window_bounds = array<i64: 8, 128>}, {transform_indices = @transform_1, window_bounds = array<i64: 8, 128>}, {transform_indices = @transform_2, window_bounds = array<i64: 8, 1>}, {transform_indices = @transform_3, window_bounds = array<i64: 8, 1>}]} {
    %c0_i32 = arith.constant 0 : i32
    %0 = arith.cmpi eq, %arg1, %c0_i32 : i32
    %1 = arith.extui %0 : i1 to i32
    %c0_i32_0 = arith.constant 0 : i32
    %2 = arith.cmpi ne, %1, %c0_i32_0 : i32
    scf.if %2 {
      %cst_15 = arith.constant 0.000000e+00 : f32
      %22 = vector.broadcast %cst_15 : f32 to vector<8x128xf32>
      %c0_16 = arith.constant 0 : index
      %c0_17 = arith.constant 0 : index
      %23 = vector.load %arg6[%c0_16, %c0_17] : memref<8x128xf32, #tpu.memory_space<vmem>>, vector<8x128xf32>
      tpu.vector_store %arg6[%c0_16, %c0_17], %22 {strides = array<i32>} : memref<8x128xf32, #tpu.memory_space<vmem>>, vector<8x128xf32>,
      %cst_18 = arith.constant 0.000000e+00 : f32
      %24 = vector.broadcast %cst_18 : f32 to vector<8x128xf32>
      %c0_19 = arith.constant 0 : index
      %c0_20 = arith.constant 0 : index
      %25 = vector.load %arg7[%c0_19, %c0_20] : memref<8x128xf32, #tpu.memory_space<vmem>>, vector<8x128xf32>
      tpu.vector_store %arg7[%c0_19, %c0_20], %24 {strides = array<i32>} : memref<8x128xf32, #tpu.memory_space<vmem>>, vector<8x128xf32>,
    } else {
    }
    %cst = arith.constant 0.000000e+00 : f32
    %3 = vector.broadcast %cst : f32 to vector<8x128xf32>
    %cst_1 = arith.constant 0.000000e+00 : f32
    %4 = vector.broadcast %cst_1 : f32 to vector<8x128xf32>
    %c0 = arith.constant 0 : index
    %c0_2 = arith.constant 0 : index
    %5 = vector.load %arg2[%c0, %c0_2] : memref<8x128xf32, #tpu.memory_space<vmem>>, vector<8x128xf32>
    %c0_3 = arith.constant 0 : index
    %c0_4 = arith.constant 0 : index
    %6 = vector.load %arg3[%c0_3, %c0_4] : memref<8x128xf32, #tpu.memory_space<vmem>>, vector<8x128xf32>
    %7 = arith.mulf %5, %6 : vector<8x128xf32>
    %8 = arith.mulf %5, %5 : vector<8x128xf32>
    %9 = arith.mulf %6, %6 : vector<8x128xf32>
    %10 = arith.addf %8, %9 : vector<8x128xf32>
    %11 = arith.addf %3, %7 : vector<8x128xf32>
    %12 = arith.addf %4, %10 : vector<8x128xf32>
    %c0_5 = arith.constant 0 : index
    %c0_6 = arith.constant 0 : index
    %13 = vector.load %arg6[%c0_5, %c0_6] : memref<8x128xf32, #tpu.memory_space<vmem>>, vector<8x128xf32>
    %14 = arith.addf %13, %11 : vector<8x128xf32>
    %c0_7 = arith.constant 0 : index
    %c0_8 = arith.constant 0 : index
    %15 = vector.load %arg6[%c0_7, %c0_8] : memref<8x128xf32, #tpu.memory_space<vmem>>, vector<8x128xf32>
    tpu.vector_store %arg6[%c0_7, %c0_8], %14 {strides = array<i32>} : memref<8x128xf32, #tpu.memory_space<vmem>>, vector<8x128xf32>,
    %c0_9 = arith.constant 0 : index
    %c0_10 = arith.constant 0 : index
    %16 = vector.load %arg7[%c0_9, %c0_10] : memref<8x128xf32, #tpu.memory_space<vmem>>, vector<8x128xf32>
    %17 = arith.addf %16, %12 : vector<8x128xf32>
    %c0_11 = arith.constant 0 : index
    %c0_12 = arith.constant 0 : index
    %18 = vector.load %arg7[%c0_11, %c0_12] : memref<8x128xf32, #tpu.memory_space<vmem>>, vector<8x128xf32>
    tpu.vector_store %arg7[%c0_11, %c0_12], %17 {strides = array<i32>} : memref<8x128xf32, #tpu.memory_space<vmem>>, vector<8x128xf32>,
    %c0_i32_13 = arith.constant 0 : i32
    %19 = arith.cmpi eq, %arg1, %c0_i32_13 : i32
    %20 = arith.extui %19 : i1 to i32
    %c0_i32_14 = arith.constant 0 : i32
    %21 = arith.cmpi ne, %20, %c0_i32_14 : i32
    scf.if %21 {
      %c0_15 = arith.constant 0 : index
      %c0_16 = arith.constant 0 : index
      %22 = vector.load %arg6[%c0_15, %c0_16] : memref<8x128xf32, #tpu.memory_space<vmem>>, vector<8x128xf32>
      %cst_17 = arith.constant dense<0.000000e+00> : vector<8xf32>
      %23 = vector.multi_reduction <add>, %22, %cst_17 [1] : vector<8x128xf32> to vector<8xf32>
      %24 = vector.shape_cast %23 : vector<8xf32> to vector<8x1xf32>
      %c0_18 = arith.constant 0 : index
      %c0_19 = arith.constant 0 : index
      %25 = vector.load %arg4[%c0_18, %c0_19] : memref<8x1xf32, #tpu.memory_space<vmem>>, vector<8x1xf32>
      tpu.vector_store %arg4[%c0_18, %c0_19], %24 {strides = array<i32>} : memref<8x1xf32, #tpu.memory_space<vmem>>, vector<8x1xf32>,
      %c0_20 = arith.constant 0 : index
      %c0_21 = arith.constant 0 : index
      %26 = vector.load %arg7[%c0_20, %c0_21] : memref<8x128xf32, #tpu.memory_space<vmem>>, vector<8x128xf32>
      %cst_22 = arith.constant dense<0.000000e+00> : vector<8xf32>
      %27 = vector.multi_reduction <add>, %26, %cst_22 [1] : vector<8x128xf32> to vector<8xf32>
      %28 = vector.shape_cast %27 : vector<8xf32> to vector<8x1xf32>
      %c0_23 = arith.constant 0 : index
      %c0_24 = arith.constant 0 : index
      %29 = vector.load %arg5[%c0_23, %c0_24] : memref<8x1xf32, #tpu.memory_space<vmem>>, vector<8x1xf32>
      tpu.vector_store %arg5[%c0_23, %c0_24], %28 {strides = array<i32>} : memref<8x1xf32, #tpu.memory_space<vmem>>, vector<8x1xf32>,
    } else {
    }
    return
  }
  func.func @transform_0(%arg0: i32, %arg1: i32) -> (i32, i32) {
    %c0_i32 = arith.constant 0 : i32
    return %arg0, %arg1 : i32, i32
  }
  func.func @transform_1(%arg0: i32, %arg1: i32) -> (i32, i32) {
    %c0_i32 = arith.constant 0 : i32
    return %arg0, %arg1 : i32, i32
  }
  func.func @transform_2(%arg0: i32, %arg1: i32) -> (i32, i32) {
    %c0_i32 = arith.constant 0 : i32
    %c0_i32_0 = arith.constant 0 : i32
    return %arg0, %c0_i32 : i32, i32
  }
  func.func @transform_3(%arg0: i32, %arg1: i32) -> (i32, i32) {
    %c0_i32 = arith.constant 0 : i32
    %c0_i32_0 = arith.constant 0 : i32
    return %arg0, %c0_i32 : i32, i32
  }
}

</mosaic_0001>

<bundles_post_ra>
// kernel: tpu_custom_call.1
= control target key start
LH: loop header
LB: loop body
LE: loop exit
PB: predicated region body
PF: predicated region fallthrough
CT: control target
= control target key end

     0   :  { %9 = vsyncpa [#allocation5], 0  ;;  %s801_s0 = inlined_call_operand.hbm [shape: f32[16,128], index: 0, kind: input, shape index: {}]   ;;  %s802_s1 = inlined_call_operand.hbm [shape: f32[16,128], index: 1, kind: input, shape index: {}]   ;;  %s803_s2 = inlined_call_operand.vmem [shape: f32[16,1], index: 2, kind: output, shape index: {0}]   ;;  %s804_s3 = inlined_call_operand.vmem [shape: f32[16,1], index: 3, kind: output, shape index: {1}]  }
   0x1   :  { %11 = vsyncpa [#allocation5 + $0x1], 0 }
   0x2   :  { %12 = vsyncpa [#allocation7], 0 }
   0x3   :  { %14 = vsyncpa [#allocation7 + $0x1], 0  ;;  %s626_s12 = smov 0   ;;  %s628_s13 = smov 0  }
   0x4   :  { %s630_s14 = smov 0   ;;  %s632_s15 = smov 0  }
   0x5   :  { %s634_s16 = smov 0   ;;  %s636_s17 = smov 0  }
   0x6 LB: > { %s413_s18 = sadd.s32 4294967295, %s602_s17   ;;  %s32_s19 = sadd.s32 1, %s598_s16  ;;  %s602_s17 = sphi %s636_s17, %s20_s17   ;;  %s598_s16 = sphi %s634_s16, %s818_s16   ;;  %s594_s15 = sphi %s632_s15, %s817_s15   ;;  %s590_s14 = sphi %s630_s14, %s816_s14   ;;  %s586_s13 = sphi %s628_s13, %s815_s13   ;;  %s582_s12 = sphi %s626_s12, %s814_s12  }
   0x7   : > { %p34_p0 = scmp.ge.s32.totalorder %s32_s19, 2  ;;  %s41_s20 = sadd.s32 1, %s590_s14 }
   0x8   : > { %p48_p1 = scmp.ne.s32.totalorder %s590_s14, %s586_s13  ;;  %p49_p2 = scmp.eq.s32.totalorder %s602_s17, 0 }
   0x9   : > { %s820_s19 = smov (%p34_p0, %s32_s19), 0  ;;  %p54_p4 = scmp.ne.s32.totalorder %s586_s13, %s582_s12 }
   0xa   : > { %p662_p3 = por %p49_p2, %p48_p1  ;;  %s36_s22 = ssub.s32 %s598_s16, %s820_s19 }
   0xb   : > { %p55_p5 = scmp.eq.s32.totalorder %s413_s18, 0  ;;  %p39_p6 = scmp.eq.s32.totalorder %s36_s22, 0 }
   0xc   : > { %p439_p8 = scmp.lt.s32.totalorder %s602_s17, 2  ;;  %s678_s25 = sand.u32 1, %s590_s14  }
   0xd   : > { %p669_p7 = por %p55_p5, %p54_p4  ;;  %s418_s26 = sshll.u32 %s598_s16, 7 }
   0xe   : > { %s675_s24 = scalar_select %p39_p6, %s590_s14, %s41_s20  }
   0xf   : > { %s807_s23 = scalar_select %p669_p7, 1, 0 }
  0x10   : > { %s417_s27 = sshll.u32 %s678_s25, 3  ;;  %s687_s30 = scalar_lea.hbm %s801_s0, %s418_s26 }
  0x11   : > { %s162_s4 = scalar_lea.vmem [#allocation4], %s417_s27  ;;  %p693_p9 = pnand %p439_p8, %p662_p3 }
  0x12   : > { %s170_s5 = sshll.u32 %s162_s4, 4  ;;  %s159_s7 = scalar_lea.sflag [#allocation5], %s678_s25  ;;  %s697_s5 = int_to_ptr.vmem [resolvable:$true] %s170_s5 }
  0x13   : > { %s488_s8 = scalar_lea.hbm %s687_s30, 128  ;;  %p490_p13 = pneg %p693_p9 }
  0x14   : > { %p489_p12 = scmp.ne.s32.totalorder %s687_s30, %s488_s8  ;;  %s493_s11 = scalar_lea.hbm %s801_s0, 256 }
  0x15   : > { %p494_p2 = scmp.lt.u32.totalorder %s687_s30, %s801_s0  ;;  %p495_p3 = scmp.lt.u32.totalorder %s493_s11, %s488_s8 }
  0x16   : > { %p491_p0 = pnand %p490_p13, %p489_p12  ;;  %p497_p5 = scmp.lt.u32.totalorder %s488_s8, %s687_s30 }
  0x17   : > { %p496_p4 = por %p495_p3, %p494_p2 }
  0x18   : > { %p492_p1 = pneg %p491_p0 }
  0x19   : > { %p498_p6 = por %p497_p5, %p496_p4 }
  0x1b   : > { %p499_p8 = pnand %p498_p6, %p492_p1 }
  0x1d   : > { %502 = shalt.err (!%p499_p8)
}
  0x1e   : > { %s503_s20 = scalar_lea.vmem %s697_s5, 128  ;;  %s604_s21 = smov [#allocation4]  }
  0x1f   : > { %p504_p12 = scmp.ne.s32.totalorder %s697_s5, %s503_s20  ;;  %s508_s22 = sshll.u32 %s604_s21, 4  ;;  %s509_s22 = int_to_ptr.vmem [resolvable:$false] %s508_s22 }
  0x20   : > { %s510_s28 = scalar_lea.vmem %s509_s22, 256  ;;  %p511_p11 = scmp.lt.s32.totalorder %s697_s5, %s509_s22 }
  0x21   : > { %p506_p0 = pnand %p504_p12, %p490_p13  ;;  %p512_p2 = scmp.lt.s32.totalorder %s510_s28, %s503_s20 }
  0x23   : > { %p507_p10 = pneg %p506_p0  ;;  %p513_p3 = por %p512_p2, %p511_p11 }
  0x25   : > { %p514_p4 = pnand %p513_p3, %p507_p10 }
  0x27   : > { %517 = shalt.err (!%p514_p4)
}
  0x28   : > { %435 = dma.hbm_to_vmem [thread:$0]  (!%p693_p9), %s687_s30, 128, %s697_s5, %s159_s7  }
  0x29   : > { %p809_p1 = scmp.lt.s32.totalorder %s602_s17, 3  ;;  %p810_p5 = scmp.ge.s32.totalorder %s602_s17, 1 }
  0x2a   : > { %s740_s9 = scalar_lea.hbm %s802_s1, %s418_s26  ;;  %s181_s10 = scalar_lea.vmem [#allocation6], %s417_s27 }
  0x2b   : > { %p731_p6 = pnand %p810_p5, %p809_p1  ;;  %s189_s11 = sshll.u32 %s181_s10, 4  ;;  %s190_s11 = int_to_ptr.vmem [resolvable:$true] %s189_s11 }
  0x2c   : > { %s178_s30 = scalar_lea.sflag [#allocation7], %s678_s25  ;;  %s518_s5 = scalar_lea.hbm %s740_s9, 128 }
  0x2d   : > { %s811_s29 = scalar_select %p731_p6, 1, 0 }
  0x2e   : > { %p519_p10 = scmp.ne.s32.totalorder %s740_s9, %s518_s5  ;;  %s523_s26 = scalar_lea.hbm %s802_s1, 256 }
  0x2f   : > { %p524_p12 = scmp.lt.u32.totalorder %s740_s9, %s802_s1  ;;  %p525_p0 = scmp.lt.u32.totalorder %s523_s26, %s518_s5 }
  0x30   : > { %p521_p11 = pnand %p519_p10, %p490_p13  ;;  %p527_p3 = scmp.lt.u32.totalorder %s518_s5, %s740_s9 }
  0x31   : > { %p526_p2 = por %p525_p0, %p524_p12 }
  0x32   : > { %p522_p8 = pneg %p521_p11 }
  0x33   : > { %p528_p4 = por %p527_p3, %p526_p2 }
  0x35   : > { %p529_p1 = pnand %p528_p4, %p522_p8 }
  0x37   : > { %532 = shalt.err (!%p529_p1)
}
  0x38   : > { %s533_s25 = scalar_lea.vmem %s190_s11, 128  ;;  %s605_s27 = smov [#allocation6]  }
  0x39   : > { %p534_p5 = scmp.ne.s32.totalorder %s190_s11, %s533_s25  ;;  %s538_s21 = sshll.u32 %s605_s27, 4  ;;  %s539_s21 = int_to_ptr.vmem [resolvable:$false] %s538_s21 }
  0x3a   : > { %s540_s22 = scalar_lea.vmem %s539_s21, 256  ;;  %p541_p7 = scmp.lt.s32.totalorder %s190_s11, %s539_s21 }
  0x3b   : > { %p536_p10 = pnand %p534_p5, %p490_p13  ;;  %p542_p6 = scmp.lt.s32.totalorder %s540_s22, %s533_s25 }
  0x3d   : > { %p537_p11 = pneg %p536_p10  ;;  %p543_p0 = por %p542_p6, %p541_p7 }
  0x3f   : > { %p544_p12 = pnand %p543_p0, %p537_p11 }
  0x41   : > { %547 = shalt.err (!%p544_p12)
}
  0x42   : > { %438 = dma.hbm_to_vmem [thread:$0]  (!%p693_p9), %s740_s9, 128, %s190_s11, %s178_s30  }
  0x43   : > { %p812_p8 = scmp.ne.s32.totalorder %s811_s29, 0 }
  0x44   : > { %s200_s28 = sand.u32 (!%p812_p8), 1, %s586_s13   ;;  %p813_p13 = scmp.ne.s32.totalorder (!%p812_p8), %s807_s23, 0 }
  0x45   : > { %198 = sbr.rel (%p812_p8) target bundleno = 229 (0xe5), region = 28  ;;  %s422_s4 = sshll.u32 (!%p812_p8), %s200_s28, 3 }
  0x46   : > { %s201_s8 = scalar_lea.sflag (!%p812_p8), [#allocation5], %s200_s28  ;;  %s204_s10 = scalar_lea.vmem (!%p812_p8), [#allocation4], %s422_s4 }
  0x4c   : > { %573 = dma.done.wait (%p813_p13), %s201_s8, 128  }
  0x4d   : > { %575 = vsyncadd (%p813_p13), %s201_s8, 4294967168  ;;  %s210_s5 = scalar_lea.sflag [#allocation7], %s200_s28  ;;  %s213_s7 = scalar_lea.vmem [#allocation6], %s422_s4 }
  0x4e   : > { %577 = dma.done.wait (%p813_p13), %s210_s5, 128  }
  0x4f   : > { %579 = vsyncadd (%p813_p13), %s210_s5, 4294967168  ;;  %v258_v0 = vld [vmem:[%s204_s10] sm:$0xff]  ;;  %v259_v1 = vld [vmem:[%s213_s7] sm:$0xff]  ;;  %p244_p7 = scmp.lt.s32.totalorder %s594_s15, 1  ;;  %vm278_vm0 = vcmask 7168  }
  0x50   : > { %v260_v2 = vmul.f32 %v259_v1, %v258_v0  ;;  %v261_v3 = vmul.f32 %v258_v0, %v258_v0  ;;  %v262_v4 = vmul.f32 %v259_v1, %v259_v1 }
  0x51   : > { %s822_s15 = smov (!%p244_p7, %s594_s15), 1 }
  0x52   : > { %276 = vadd.xlane.f32.xlu0 %v260_v2  ;;  %v263_v5 = vadd.f32 %v262_v4, %v261_v3  ;;  %s424_s6 = sshll.u32 %s822_s15, 3 }
  0x53   : > { %s247_s11 = scalar_lea.vmem %s803_s2, %s424_s6  ;;  %s251_s12 = scalar_lea.vmem %s804_s3, %s424_s6 }
  0x56   : > { %281 = vadd.xlane.f32.xlu0 %v263_v5 }
  0xdf   : > { %v277_v6 = vpop.xlane.xlu0 %276 }
  0xe0   : > { %279 = vst.msk [vmem:[%s247_s11] sm:$0xff] %vm278_vm0, %v277_v6 }
  0xe3   : > { %v282_v7 = vpop.xlane.xlu0 %281 }
  0xe4   : > { %283 = vst.msk [vmem:[%s251_s12] sm:$0xff] %vm278_vm0, %v282_v7 }
  0xe5 PF: > { %s20_s17 = sadd.s32 1, %s602_s17   ;;  %s814_s12 = smov %s586_s13 }
  0xe6   : > { %p17_p9 = scmp.ge.s32.totalorder %s20_s17, 4   ;;  %s815_s13 = smov %s590_s14 }
  0xe7   : > { %s816_s14 = smov %s675_s24  ;;  %s817_s15 = smov %s598_s16 }
  0xe8   : > { %s818_s16 = smov %s820_s19  ;;  %19 = sbr.rel (!%p17_p9) target bundleno = 6 (0x6), region = 101 }
  0xef   :  { %317 = vsyncpa [#allocation5], 1 }
  0xf0   :  { %319 = vsyncpa [#allocation5 + $0x1], 1 }
  0xf1   :  { %320 = vsyncpa [#allocation7], 1 }
  0xf2   :  { %322 = vsyncpa [#allocation7 + $0x1], 1 }

</bundles_post_ra>
